<compile_context>
chip_gen: v6e
topology: v6e:2x2x1
jax: 0.10.0
libtpu: 0.0.40
codegen_flags: <defaults>
</compile_context>

<pallas_src>
import numpy as np
import jax
import jax.numpy as jnp
from jax.experimental import pallas as pl
from jax.experimental.pallas import tpu as pltpu


def _round_up(x, m):
    return ((x + m - 1) // m) * m


# ----------------------------------------------------------------------------
# Pallas kernel: one fused URNN step
#   pre       = x @ Wih_packed + [zr | zi] @ Wblk      (two MXU matmuls)
#   new_state = modReLU(pre, b_h)                       (VPU + EUP)
# All lane dims are multiples of 128.
# ----------------------------------------------------------------------------
def urnn_kernel(x_ref, h_ref, wih_ref, wblk_ref, bh_ref, out_ref):
    NP = bh_ref.shape[1]                     # padded hidden size (multiple of 128)

    pre = jnp.dot(x_ref[...], wih_ref[...], preferred_element_type=jnp.float32)
    pre = pre + jnp.dot(h_ref[...], wblk_ref[...],
                        preferred_element_type=jnp.float32)

    pr = pre[:, :NP]                         # real plane (lane-aligned slice)
    pi = pre[:, NP:]                         # imag plane (lane-aligned slice)
    norm = jnp.sqrt(pr * pr + pi * pi)
    # modReLU: relu(|z| + b) / (|z| + 1e-6); divide goes to the EUP slot.
    scale = jnp.maximum(norm + bh_ref[...], 0.0) * pl.reciprocal(
        norm + 1e-6, approx=True)

    # Both halves are full 128-multiple lane tiles -> unmasked, lane-dense stores.
    out_ref[:, :NP] = pr * scale
    out_ref[:, NP:] = pi * scale


# ----------------------------------------------------------------------------
# Wrapper: pads state to lane-aligned planes, runs the batched-grid kernel,
# strips the padding. Returns (output, new_state), both (B, 2*num_units).
# ----------------------------------------------------------------------------
def urnn_cell_forward(inputs, state, params):
    B, num_in = inputs.shape
    N, NP = params["N"], params["NP"]

    # Pack state (B, 2N) -> padded planes (B, 2*NP): [zr | 0 | zi | 0].
    zr = state[:, :N]
    zi = state[:, N:]
    h = jnp.concatenate(
        [jnp.pad(zr, ((0, 0), (0, NP - N))),
         jnp.pad(zi, ((0, 0), (0, NP - N)))], axis=1)

    TB = B if B <= 128 else 128
    grid = (pl.cdiv(B, TB),)

    out_p = pl.pallas_call(
        urnn_kernel,
        out_shape=jax.ShapeDtypeStruct((B, 2 * NP), jnp.float32),
        grid=grid,
        in_specs=[
            pl.BlockSpec((TB, num_in), lambda i: (i, 0)),        # inputs
            pl.BlockSpec((TB, 2 * NP), lambda i: (i, 0)),        # padded state
            pl.BlockSpec((num_in, 2 * NP), lambda i: (0, 0)),    # packed w_ih.T
            pl.BlockSpec((2 * NP, 2 * NP), lambda i: (0, 0)),    # composed unitary
            pl.BlockSpec((1, NP), lambda i: (0, 0)),             # bias
        ],
        out_specs=pl.BlockSpec((TB, 2 * NP), lambda i: (i, 0)),
        compiler_params=pltpu.CompilerParams(
            dimension_semantics=("parallel",)),
    )(inputs, h, params["w_ih_t_p"], params["w_blk"], params["b_h_p"])

    new_state = jnp.concatenate([out_p[:, :N], out_p[:, NP:NP + N]], axis=1)
    return new_state, new_state


# ----------------------------------------------------------------------------
# Deterministic raw parameters (mirrors URNNCell.__init__ shapes)
# ----------------------------------------------------------------------------
def make_raw_params(key, num_units, num_in):
    N = num_units
    k = jax.random.split(key, 9)
    lim = float(np.sqrt(6.0 / (2 * N + num_in)))          # xavier_uniform bound
    return {
        "N": N,
        "w_ih": jax.random.uniform(k[0], (2 * N, num_in), jnp.float32, -lim, lim),
        "b_h": jnp.zeros((N,), jnp.float32),
        "w_d1": jax.random.uniform(k[1], (N,), jnp.float32, -np.pi, np.pi),
        "w_d2": jax.random.uniform(k[2], (N,), jnp.float32, -np.pi, np.pi),
        "w_d3": jax.random.uniform(k[3], (N,), jnp.float32, -np.pi, np.pi),
        "r1_re": jax.random.uniform(k[4], (N,), jnp.float32, -1.0, 1.0),
        "r1_im": jax.random.uniform(k[5], (N,), jnp.float32, -1.0, 1.0),
        "r2_re": jax.random.uniform(k[6], (N,), jnp.float32, -1.0, 1.0),
        "r2_im": jax.random.uniform(k[7], (N,), jnp.float32, -1.0, 1.0),
        "perm": jax.random.permutation(k[8], N),
    }


# ----------------------------------------------------------------------------
# Host-side pre-composition of the fixed unitary + lane padding.
#   z_out = z @ M,  M = D1 F R1 P D2 F^-1 R2 D3   (row-vector convention)
# Packed as a real block matrix so [zr|zi] @ Wblk = [Re(zM) | Im(zM)].
# ----------------------------------------------------------------------------
def make_kernel_params(raw, num_in):
    N = raw["N"]
    NP = max(128, _round_up(N, 128))

    def diag_c(w):
        w = np.asarray(w, np.float64)
        return np.diag(np.cos(w) + 1j * np.sin(w))

    def refl_mat(re, im):
        v = np.asarray(re, np.float64) + 1j * np.asarray(im, np.float64)
        factor = 2.0 / (np.sum(np.abs(v) ** 2) + 1e-6)
        return np.eye(N) - factor * np.outer(np.conj(v), v)

    nk = np.outer(np.arange(N), np.arange(N)).astype(np.float64)
    F = np.exp(-2j * np.pi * nk / N)          # torch.fft.fft along dim=1
    Finv = np.exp(2j * np.pi * nk / N) / N    # torch.fft.ifft along dim=1

    perm = np.asarray(raw["perm"])
    Pm = np.zeros((N, N), np.float64)
    Pm[perm, np.arange(N)] = 1.0              # out[:, j] = z[:, perm[j]]

    M = (diag_c(raw["w_d1"]) @ F @ refl_mat(raw["r1_re"], raw["r1_im"]) @ Pm
         @ diag_c(raw["w_d2"]) @ Finv @ refl_mat(raw["r2_re"], raw["r2_im"])
         @ diag_c(raw["w_d3"]))
    Wr = np.real(M).astype(np.float32)
    Wi = np.imag(M).astype(np.float32)

    Wblk = np.zeros((2 * NP, 2 * NP), np.float32)
    Wblk[:N, :N] = Wr
    Wblk[:N, NP:NP + N] = Wi
    Wblk[NP:NP + N, :N] = -Wi
    Wblk[NP:NP + N, NP:NP + N] = Wr

    wt = np.asarray(raw["w_ih"], np.float32).T          # (num_in, 2N)
    w_ih_t_p = np.zeros((num_in, 2 * NP), np.float32)
    w_ih_t_p[:, :N] = wt[:, :N]                          # real half
    w_ih_t_p[:, NP:NP + N] = wt[:, N:]                   # imag half

    b_h_p = np.zeros((1, NP), np.float32)
    b_h_p[0, :N] = np.asarray(raw["b_h"], np.float32)    # padded lanes stay 0

    return {
        "N": N, "NP": NP,
        "w_blk": jnp.asarray(Wblk),
        "w_ih_t_p": jnp.asarray(w_ih_t_p),
        "b_h_p": jnp.asarray(b_h_p),
    }


# ----------------------------------------------------------------------------
# Pure-JAX reference (mirrors the PyTorch forward) for verification
# ----------------------------------------------------------------------------
def ref_forward(inputs, state, raw):
    N = raw["N"]
    inputs_mul = inputs @ raw["w_ih"].T
    inc = inputs_mul[:, :N] + 1j * inputs_mul[:, N:]
    z = state[:, :N].astype(jnp.complex64) + 1j * state[:, N:].astype(jnp.complex64)

    def dmul(z, w):
        return (jnp.cos(w) + 1j * jnp.sin(w)) * z

    def refl(z, re, im):
        v = re + 1j * im
        vstar_z = z @ jnp.conj(v)[:, None]
        factor = 2.0 / (jnp.sum(jnp.abs(v) ** 2) + 1e-6)
        return z - factor * vstar_z * v[None, :]

    z = dmul(z, raw["w_d1"])
    z = jnp.fft.fft(z, axis=1)
    z = refl(z, raw["r1_re"], raw["r1_im"])
    z = z[:, raw["perm"]]
    z = dmul(z, raw["w_d2"])
    z = jnp.fft.ifft(z, axis=1)
    z = refl(z, raw["r2_re"], raw["r2_im"])
    z = dmul(z, raw["w_d3"])
    pre = inc + z
    norm = jnp.abs(pre)
    scale = jax.nn.relu(norm + raw["b_h"]) / (norm + 1e-6)
    ns = pre * scale
    return jnp.concatenate([jnp.real(ns), jnp.imag(ns)], axis=1)


# ----------------------------------------------------------------------------
if __name__ == "__main__":
    B, NUM_UNITS, NUM_IN = 2, 32, 16

    key = jax.random.PRNGKey(0)
    kp, kx, kh = jax.random.split(key, 3)

    raw = make_raw_params(kp, NUM_UNITS, NUM_IN)
    params = make_kernel_params(raw, NUM_IN)

    inputs = jax.random.normal(kx, (B, NUM_IN), jnp.float32)
    state = jax.random.normal(kh, (B, 2 * NUM_UNITS), jnp.float32)

    output, new_state = urnn_cell_forward(inputs, state, params)
    output = jax.block_until_ready(output)

    ref = np.asarray(ref_forward(inputs, state, raw))
    # Default (bf16-multiply) MXU precision on the composed matmul -> ~1e-3 level
    # error; 2e-2 tolerance gives comfortable margin while catching real bugs.
    np.testing.assert_allclose(np.asarray(output), ref, rtol=2e-2, atol=2e-2)

    print("KERNEL_OK")
</pallas_src>

<mosaic_0001>
module attributes {stable_mosaic.version = 11 : i64} {
  func.func @urnn_kernel(%arg0: i32, %arg1: memref<2x16xf32, #tpu.memory_space<vmem>>, %arg2: memref<2x256xf32, #tpu.memory_space<vmem>>, %arg3: memref<16x256xf32, #tpu.memory_space<vmem>>, %arg4: memref<256x256xf32, #tpu.memory_space<vmem>>, %arg5: memref<1x128xf32, #tpu.memory_space<vmem>>, %arg6: memref<2x256xf32, #tpu.memory_space<vmem>>) attributes {dimension_semantics = [#tpu.dimension_semantics<parallel>], iteration_bounds = array<i64: 1>, scalar_prefetch = 0 : i64, scratch_operands = 0 : i64, tpu.core_type = #tpu.core_type<tc>, window_params = [{transform_indices = @transform_0, window_bounds = array<i64: 2, 16>}, {transform_indices = @transform_1, window_bounds = array<i64: 2, 256>}, {pipeline_mode = #tpu.pipeline_mode<synchronous>, transform_indices = @transform_2, window_bounds = array<i64: 16, 256>}, {pipeline_mode = #tpu.pipeline_mode<synchronous>, transform_indices = @transform_3, window_bounds = array<i64: 256, 256>}, {pipeline_mode = #tpu.pipeline_mode<synchronous>, transform_indices = @transform_4, window_bounds = array<i64: 1, 128>}, {transform_indices = @transform_5, window_bounds = array<i64: 2, 256>}]} {
    %c0 = arith.constant 0 : index
    %c0_0 = arith.constant 0 : index
    %0 = vector.load %arg1[%c0, %c0_0] : memref<2x16xf32, #tpu.memory_space<vmem>>, vector<2x16xf32>
    %c0_1 = arith.constant 0 : index
    %c0_2 = arith.constant 0 : index
    %1 = vector.load %arg3[%c0_1, %c0_2] : memref<16x256xf32, #tpu.memory_space<vmem>>, vector<16x256xf32>
    %cst = arith.constant dense<0.000000e+00> : vector<2x256xf32>
    %2 = tpu.matmul %0, %1, %cst {dimension_numbers = #tpu.dot_dimension_numbers<[1], [0], [0], [1], [0, 0, 1, 1], [], []>} : vector<2x16xf32>, vector<16x256xf32>, vector<2x256xf32> -> vector<2x256xf32>
    %c0_3 = arith.constant 0 : index
    %c0_4 = arith.constant 0 : index
    %3 = vector.load %arg2[%c0_3, %c0_4] : memref<2x256xf32, #tpu.memory_space<vmem>>, vector<2x256xf32>
    %c0_5 = arith.constant 0 : index
    %c0_6 = arith.constant 0 : index
    %4 = vector.load %arg4[%c0_5, %c0_6] : memref<256x256xf32, #tpu.memory_space<vmem>>, vector<256x256xf32>
    %cst_7 = arith.constant dense<0.000000e+00> : vector<2x256xf32>
    %5 = tpu.matmul %3, %4, %cst_7 {dimension_numbers = #tpu.dot_dimension_numbers<[1], [0], [0], [1], [0, 0, 1, 1], [], []>} : vector<2x256xf32>, vector<256x256xf32>, vector<2x256xf32> -> vector<2x256xf32>
    %6 = arith.addf %2, %5 : vector<2x256xf32>
    %7 = vector.extract_strided_slice %6 {offsets = [0, 0], sizes = [2, 128], strides = [1, 1]} : vector<2x256xf32> to vector<2x128xf32>
    %8 = vector.extract_strided_slice %6 {offsets = [0, 128], sizes = [2, 128], strides = [1, 1]} : vector<2x256xf32> to vector<2x128xf32>
    %9 = arith.mulf %7, %7 : vector<2x128xf32>
    %10 = arith.mulf %8, %8 : vector<2x128xf32>
    %11 = arith.addf %9, %10 : vector<2x128xf32>
    %12 = math.sqrt %11 : vector<2x128xf32>
    %c0_8 = arith.constant 0 : index
    %c0_9 = arith.constant 0 : index
    %13 = vector.load %arg5[%c0_8, %c0_9] : memref<1x128xf32, #tpu.memory_space<vmem>>, vector<1x128xf32>
    %14 = vector.broadcast %13 : vector<1x128xf32> to vector<2x128xf32>
    %15 = arith.addf %12, %14 : vector<2x128xf32>
    %cst_10 = arith.constant 0.000000e+00 : f32
    %16 = vector.broadcast %cst_10 : f32 to vector<2x128xf32>
    %17 = arith.maximumf %15, %16 : vector<2x128xf32>
    %cst_11 = arith.constant 9.99999997E-7 : f32
    %18 = vector.broadcast %cst_11 : f32 to vector<2x128xf32>
    %19 = arith.addf %12, %18 : vector<2x128xf32>
    %20 = tpu.reciprocal %19 {approx = true} : vector<2x128xf32> -> vector<2x128xf32>
    %21 = arith.mulf %17, %20 : vector<2x128xf32>
    %22 = arith.mulf %7, %21 : vector<2x128xf32>
    %c0_12 = arith.constant 0 : index
    %c0_13 = arith.constant 0 : index
    %23 = vector.load %arg6[%c0_12, %c0_13] : memref<2x256xf32, #tpu.memory_space<vmem>>, vector<2x128xf32>
    tpu.vector_store %arg6[%c0_12, %c0_13], %22 {strides = array<i32>} : memref<2x256xf32, #tpu.memory_space<vmem>>, vector<2x128xf32>,
    %24 = arith.mulf %8, %21 : vector<2x128xf32>
    %c0_14 = arith.constant 0 : index
    %c128 = arith.constant 128 : index
    %25 = vector.load %arg6[%c0_14, %c128] : memref<2x256xf32, #tpu.memory_space<vmem>>, vector<2x128xf32>
    tpu.vector_store %arg6[%c0_14, %c128], %24 {strides = array<i32>} : memref<2x256xf32, #tpu.memory_space<vmem>>, vector<2x128xf32>,
    return
  }
  func.func @transform_0(%arg0: i32) -> (i32, i32) {
    %c0_i32 = arith.constant 0 : i32
    %c0_i32_0 = arith.constant 0 : i32
    return %arg0, %c0_i32 : i32, i32
  }
  func.func @transform_1(%arg0: i32) -> (i32, i32) {
    %c0_i32 = arith.constant 0 : i32
    %c0_i32_0 = arith.constant 0 : i32
    return %arg0, %c0_i32 : i32, i32
  }
  func.func @transform_2(%arg0: i32) -> (i32, i32) {
    %c0_i32 = arith.constant 0 : i32
    %c0_i32_0 = arith.constant 0 : i32
    %c0_i32_1 = arith.constant 0 : i32
    return %c0_i32, %c0_i32_0 : i32, i32
  }
  func.func @transform_3(%arg0: i32) -> (i32, i32) {
    %c0_i32 = arith.constant 0 : i32
    %c0_i32_0 = arith.constant 0 : i32
    %c0_i32_1 = arith.constant 0 : i32
    return %c0_i32, %c0_i32_0 : i32, i32
  }
  func.func @transform_4(%arg0: i32) -> (i32, i32) {
    %c0_i32 = arith.constant 0 : i32
    %c0_i32_0 = arith.constant 0 : i32
    %c0_i32_1 = arith.constant 0 : i32
    return %c0_i32, %c0_i32_0 : i32, i32
  }
  func.func @transform_5(%arg0: i32) -> (i32, i32) {
    %c0_i32 = arith.constant 0 : i32
    %c0_i32_0 = arith.constant 0 : i32
    return %arg0, %c0_i32 : i32, i32
  }
}

</mosaic_0001>

<bundles_post_ra>
// kernel: tpu_custom_call.1
= control target key start
LH: loop header
LB: loop body
LE: loop exit
PB: predicated region body
PF: predicated region fallthrough
CT: control target
= control target key end

     0   :  { %10 = vsyncpa [#allocation3], 0  ;;  %s526_s0 = inlined_call_operand.hbm [shape: f32[2,16], index: 0, kind: input, shape index: {}]   ;;  %s527_s1 = inlined_call_operand.hbm [shape: f32[2,256], index: 1, kind: input, shape index: {}]   ;;  %s528_s2 = inlined_call_operand.hbm [shape: f32[16,256], index: 2, kind: input, shape index: {}]   ;;  %s529_s3 = inlined_call_operand.hbm [shape: f32[256,256], index: 3, kind: input, shape index: {}]   ;;  %s530_s4 = inlined_call_operand.vmem [shape: f32[1,128], index: 4, kind: input, shape index: {}]   ;;  %s531_s5 = inlined_call_operand.hbm [shape: f32[2,256], index: 5, kind: output, shape index: {}]  }
   0x1   :  { %11 = vsyncpa [#allocation6], 0 }
   0x2   :  { %12 = vsyncpa [#allocation9], 0 }
   0x3   :  { %13 = vsyncpa [#allocation4], 0  ;;  %s465_s18 = smov [#allocation5]   ;;  %s466_s20 = smov [#allocation2]  }
   0x4   :  { %s30_s19 = sshll.u32 %s465_s18, 4  ;;  %s20_s21 = sshll.u32 %s466_s20, 4  ;;  %s31_s19 = int_to_ptr.vmem [resolvable:$true] %s30_s19  ;;  %s21_s21 = int_to_ptr.vmem [resolvable:$true] %s20_s21 }
   0x5   :  { %s365_s22 = scalar_lea.vmem %s31_s19, 64  ;;  %p370_p1 = scmp.lt.s32.totalorder %s31_s19, %s31_s19 }
   0x6   :  { %p366_p0 = scmp.ne.s32.totalorder %s31_s19, %s365_s22  ;;  %p371_p2 = scmp.lt.s32.totalorder %s365_s22, %s365_s22 }
   0x8   :  { %p372_p3 = por %p371_p2, %p370_p1 }
   0xa   :  { %p373_p4 = pnand %p372_p3, %p366_p0 }
   0xc   :  { %376 = shalt.err (!%p373_p4)
}
   0xd   :  { %33 = dma.hbm_to_vmem [thread:$0]  %s527_s1, 64, %s31_s19, [#allocation6]  }
   0xe   :  { %s385_s25 = scalar_lea.vmem %s21_s21, 32  ;;  %p390_p6 = scmp.lt.s32.totalorder %s21_s21, %s21_s21 }
   0xf   :  { %p386_p5 = scmp.ne.s32.totalorder %s21_s21, %s385_s25  ;;  %p391_p7 = scmp.lt.s32.totalorder %s385_s25, %s385_s25 }
  0x11   :  { %p392_p8 = por %p391_p7, %p390_p6 }
  0x13   :  { %p393_p9 = pnand %p392_p8, %p386_p5 }
  0x15   :  { %396 = shalt.err (!%p393_p9)
}
  0x16   :  { %23 = dma.hbm_to_vmem [thread:$0]  %s526_s0, 32, %s21_s21, [#allocation3]  }
  0x17   :  { %s467_s28 = smov [#allocation7]  }
  0x18   :  { %s39_s29 = sshll.u32 %s467_s28, 4  ;;  %s40_s29 = int_to_ptr.vmem [resolvable:$true] %s39_s29 }
  0x19   :  { %s405_s30 = scalar_lea.vmem %s40_s29, 512  ;;  %p410_p11 = scmp.lt.s32.totalorder %s40_s29, %s40_s29 }
  0x1a   :  { %p406_p10 = scmp.ne.s32.totalorder %s40_s29, %s405_s30  ;;  %p411_p12 = scmp.lt.s32.totalorder %s405_s30, %s405_s30 }
  0x1c   :  { %p412_p13 = por %p411_p12, %p410_p11 }
  0x1e   :  { %p413_p0 = pnand %p412_p13, %p406_p10 }
  0x20   :  { %416 = shalt.err (!%p413_p0)
}
  0x21   :  { %s468_s1 = smov 256   ;;  %s469_s6 = smov 16  }
  0x22   :  { %45 = dma.hbm_to_vmem [thread:$0]  %s528_s2, 512, %s40_s29, [#allocation6], %s468_s1, %s468_s1, %s469_s6  }
  0x23   :  { %s470_s9 = smov [#allocation8]  }
  0x24   :  { %s51_s10 = sshll.u32 %s470_s9, 4  ;;  %s52_s10 = int_to_ptr.vmem [resolvable:$true] %s51_s10 }
  0x25   :  { %s425_s0 = scalar_lea.vmem %s52_s10, 8192  ;;  %p430_p2 = scmp.lt.s32.totalorder %s52_s10, %s52_s10 }
  0x26   :  { %p426_p1 = scmp.ne.s32.totalorder %s52_s10, %s425_s0  ;;  %p431_p3 = scmp.lt.s32.totalorder %s425_s0, %s425_s0 }
  0x28   :  { %p432_p4 = por %p431_p3, %p430_p2 }
  0x2a   :  { %p433_p5 = pnand %p432_p4, %p426_p1 }
  0x2c   :  { %436 = shalt.err (!%p433_p5)
}
  0x2d   :  { %57 = dma.hbm_to_vmem [thread:$0]  %s529_s3, 8192, %s52_s10, [#allocation9], %s468_s1, %s468_s1, %s469_s6  }
  0x2e   :  { %457 = dma.done.wait [#allocation3], 32  }
  0x2f   :  { %458 = vsyncadd [#allocation3], 4294967264 }
  0x30   :  { %459 = dma.done.wait [#allocation6], 576  }
  0x31   :  { %460 = vsyncadd [#allocation6], 4294966720 }
  0x32   :  { %461 = dma.done.wait [#allocation9], 8192  }
  0x33   :  { %462 = vsyncadd [#allocation9], 4294959104  ;;  %v471_v0 = vmov 0.0   ;;  %v109_v1 = vld [vmem:[#allocation8 + $0xf8] sm:$0xff]  ;;  %v108_v2 = vld [vmem:[#allocation8 + $0xf0] sm:$0xff]  ;;  %vm224_vm0 = vcmask 130048  }
  0x34   :  { %292 = vmatprep.mubr.f32.mxu1 %v471_v0  ;;  %v107_v3 = vld [vmem:[#allocation8 + $0xe8] sm:$0xff]  ;;  %153 = vmatprep.subr.mxu0 %v109_v1  ;;  %v106_v4 = vld [vmem:[#allocation8 + $0xe0] sm:$0xff]  ;;  %v105_v5 = vld [vmem:[#allocation8 + $0xd8] sm:$0xff]  ;;  %s472_s13 = smov [#allocation10]  }
  0x35   :  { %154 = vmatpush1.msra.mxu0 %v108_v2  ;;  %v104_v6 = vld [vmem:[#allocation8 + $0xd0] sm:$0xff]  ;;  %v103_v7 = vld [vmem:[#allocation8 + $0xc8] sm:$0xff]  ;;  %v102_v8 = vld [vmem:[#allocation8 + $0xc0] sm:$0xff]  ;;  %s331_s14 = sshll.u32 %s472_s13, 4  ;;  %s332_s14 = int_to_ptr.vmem [resolvable:$true] %s331_s14 }
  0x36   :  { %155 = vmatprep.subr.mxu0 %v107_v3  ;;  %v101_v9 = vld [vmem:[#allocation8 + $0xb8] sm:$0xff]  ;;  %v100_v10 = vld [vmem:[#allocation8 + $0xb0] sm:$0xff]  ;;  %v99_v11 = vld [vmem:[#allocation8 + $0xa8] sm:$0xff]  ;;  %s437_s15 = scalar_lea.vmem %s332_s14, 64  ;;  %p442_p7 = scmp.lt.s32.totalorder %s332_s14, %s332_s14 }
  0x37   :  { %156 = vmatpush1.msra.mxu0 %v106_v4  ;;  %v98_v12 = vld [vmem:[#allocation8 + $0xa0] sm:$0xff]  ;;  %v97_v13 = vld [vmem:[#allocation8 + $0x98] sm:$0xff]  ;;  %v96_v14 = vld [vmem:[#allocation8 + $0x90] sm:$0xff]  ;;  %p438_p6 = scmp.ne.s32.totalorder %s332_s14, %s437_s15  ;;  %p443_p8 = scmp.lt.s32.totalorder %s437_s15, %s437_s15 }
  0x38   :  { %157 = vmatprep.subr.mxu0 %v105_v5  ;;  %v95_v15 = vld [vmem:[#allocation8 + $0x88] sm:$0xff]  ;;  %v94_v16 = vld [vmem:[#allocation8 + $0x80] sm:$0xff]  ;;  %v93_v17 = vld [vmem:[#allocation8 + $0x78] sm:$0xff] }
  0x39   :  { %158 = vmatpush1.msra.mxu0 %v104_v6  ;;  %v92_v18 = vld [vmem:[#allocation8 + $0x70] sm:$0xff]  ;;  %v91_v19 = vld [vmem:[#allocation8 + $0x68] sm:$0xff]  ;;  %v90_v20 = vld [vmem:[#allocation8 + $0x60] sm:$0xff]  ;;  %p444_p9 = por %p443_p8, %p442_p7 }
  0x3a   :  { %159 = vmatprep.subr.mxu0 %v103_v7  ;;  %v89_v21 = vld [vmem:[#allocation8 + $0x58] sm:$0xff]  ;;  %v88_v22 = vld [vmem:[#allocation8 + $0x50] sm:$0xff]  ;;  %v87_v24 = vld [vmem:[#allocation8 + $0x48] sm:$0xff] }
  0x3b   :  { %160 = vmatpush1.msra.mxu0 %v102_v8  ;;  %v76_v23 = vld [vmem:[#allocation7 + $0x18] sm:$0xff]  ;;  %v75_v25 = vld [vmem:[#allocation7 + $0x10] sm:$0xff]  ;;  %v86_v26 = vld [vmem:[#allocation8 + $0x40] sm:$0xff]  ;;  %p445_p10 = pnand %p444_p9, %p438_p6 }
  0x3c   :  { %161 = vmatprep.subr.mxu0 %v101_v9  ;;  %256 = vmatprep.subr.mxu1 %v76_v23  ;;  %v74_v27 = vld [vmem:[#allocation7 + $0x8] sm:$0xff]  ;;  %v73_v28 = vld [vmem:[#allocation7] sm:$0xff]  ;;  %v85_v29 = vld [vmem:[#allocation8 + $0x38] sm:$0xff] }
  0x3d   :  { %162 = vmatpush1.msra.mxu0 %v100_v10  ;;  %257 = vmatpush1.msra.mxu1 %v75_v25  ;;  %v72_v30 = vld [vmem:[#allocation2] sm:$0x3]  ;;  %v84_v31 = vld [vmem:[#allocation8 + $0x30] sm:$0xff]  ;;  %v83_v33 = vld [vmem:[#allocation8 + $0x28] sm:$0xff] }
  0x3e   :  { %163 = vmatprep.subr.mxu0 %v99_v11  ;;  %258 = vmatprep.subr.mxu1 %v74_v27  ;;  %v515_v32 = vld.sshfl [vmem:[#allocation5] sm:$0x33 pattern:$0x76325410]  ;;  %v82_v35 = vld [vmem:[#allocation8 + $0x20] sm:$0xff]  ;;  %v80_v37 = vld [vmem:[#allocation8 + $0x10] sm:$0xff] }
  0x3f   :  { %164 = vmatpush1.msra.mxu0 %v98_v12  ;;  %259 = vmatpush1.msra.mxu1 %v73_v28  ;;  %v150_v34 = vcombine.high %v515_v32, %v515_v32  ;;  %v81_v36 = vld [vmem:[#allocation8 + $0x18] sm:$0xff]  ;;  %v79_v38 = vld [vmem:[#allocation8 + $0x8] sm:$0xff]  ;;  %v78_v39 = vld [vmem:[#allocation8] sm:$0xff] }
  0x40   :  { %165 = vmatprep.subr.mxu0 %v97_v13  ;;  %343 = vmatmul.mubr.msk.f32.vlgmr.msra.gmra.mxu1 %vm224_vm0, %v72_v30  ;;  %v141_v40 = vld [vmem:[#allocation8 + $0x1f8] sm:$0xff]  ;;  %v140_v41 = vld [vmem:[#allocation8 + $0x1f0] sm:$0xff]  ;;  %v139_v42 = vld [vmem:[#allocation8 + $0x1e8] sm:$0xff] }
  0x41   :  { %166 = vmatpush1.msra.mxu0 %v96_v14  ;;  %217 = vmatprep.mubr.f32.mxu0 %v150_v34  ;;  %v138_v43 = vld [vmem:[#allocation8 + $0x1e0] sm:$0xff]  ;;  %v137_v44 = vld [vmem:[#allocation8 + $0x1d8] sm:$0xff]  ;;  %v136_v45 = vld [vmem:[#allocation8 + $0x1d0] sm:$0xff] }
  0x42   :  { %167 = vmatprep.subr.mxu0 %v95_v15  ;;  %v135_v46 = vld [vmem:[#allocation8 + $0x1c8] sm:$0xff]  ;;  %v134_v47 = vld [vmem:[#allocation8 + $0x1c0] sm:$0xff]  ;;  %v133_v48 = vld [vmem:[#allocation8 + $0x1b8] sm:$0xff] }
  0x43   :  { %168 = vmatpush1.msra.mxu0 %v94_v16  ;;  %v132_v49 = vld [vmem:[#allocation8 + $0x1b0] sm:$0xff]  ;;  %v131_v50 = vld [vmem:[#allocation8 + $0x1a8] sm:$0xff]  ;;  %v130_v51 = vld [vmem:[#allocation8 + $0x1a0] sm:$0xff] }
  0x44   :  { %169 = vmatprep.subr.mxu0 %v93_v17  ;;  %v129_v52 = vld [vmem:[#allocation8 + $0x198] sm:$0xff]  ;;  %v128_v53 = vld [vmem:[#allocation8 + $0x190] sm:$0xff]  ;;  %v127_v54 = vld [vmem:[#allocation8 + $0x188] sm:$0xff] }
  0x45   :  { %170 = vmatpush1.msra.mxu0 %v92_v18  ;;  %v126_v55 = vld [vmem:[#allocation8 + $0x180] sm:$0xff]  ;;  %v125_v56 = vld [vmem:[#allocation8 + $0x178] sm:$0xff]  ;;  %v124_v57 = vld [vmem:[#allocation8 + $0x170] sm:$0xff] }
  0x46   :  { %171 = vmatprep.subr.mxu0 %v91_v19  ;;  %v123_v58 = vld [vmem:[#allocation8 + $0x168] sm:$0xff]  ;;  %v122_v59 = vld [vmem:[#allocation8 + $0x160] sm:$0xff]  ;;  %v121_v60 = vld [vmem:[#allocation8 + $0x158] sm:$0xff] }
  0x47   :  { %172 = vmatpush1.msra.mxu0 %v90_v20  ;;  %v120_v61 = vld [vmem:[#allocation8 + $0x150] sm:$0xff]  ;;  %v119_v62 = vld [vmem:[#allocation8 + $0x148] sm:$0xff]  ;;  %v118_v63 = vld [vmem:[#allocation8 + $0x140] sm:$0xff] }
  0x48   :  { %173 = vmatprep.subr.mxu0 %v89_v21  ;;  %v117_v0 = vld [vmem:[#allocation8 + $0x138] sm:$0xff]  ;;  %v116_v1 = vld [vmem:[#allocation8 + $0x130] sm:$0xff]  ;;  %v115_v2 = vld [vmem:[#allocation8 + $0x128] sm:$0xff] }
  0x49   :  { %174 = vmatpush1.msra.mxu0 %v88_v22  ;;  %v114_v3 = vld [vmem:[#allocation8 + $0x120] sm:$0xff]  ;;  %v113_v4 = vld [vmem:[#allocation8 + $0x118] sm:$0xff]  ;;  %v112_v5 = vld [vmem:[#allocation8 + $0x110] sm:$0xff] }
  0x4a   :  { %175 = vmatprep.subr.mxu0 %v87_v24  ;;  %v111_v6 = vld [vmem:[#allocation8 + $0x108] sm:$0xff]  ;;  %v110_v7 = vld [vmem:[#allocation8 + $0x100] sm:$0xff]  ;;  %v344_v23 = vld [vmem:[%s530_s4] ss:$0 sm:$0xff] }
  0x4b   :  { %176 = vmatpush1.msra.mxu0 %v86_v26 }
  0x4c   :  { %177 = vmatprep.subr.mxu0 %v85_v29 }
  0x4d   :  { %178 = vmatpush1.msra.mxu0 %v84_v31 }
  0x4e   :  { %179 = vmatprep.subr.mxu0 %v83_v33 }
  0x4f   :  { %180 = vmatpush1.msra.mxu0 %v82_v35 }
  0x50   :  { %181 = vmatprep.subr.mxu0 %v81_v36 }
  0x51   :  { %182 = vmatpush1.msra.mxu0 %v80_v37 }
  0x52   :  { %183 = vmatprep.subr.mxu0 %v79_v38 }
  0x53   :  { %184 = vmatpush1.msra.mxu0 %v78_v39 }
  0x54   :  { %185 = vmatprep.subr.mxu0 %v141_v40 }
  0x55   :  { %186 = vmatpush2.msra.mxu0 %v140_v41 }
  0x56   :  { %187 = vmatprep.subr.mxu0 %v139_v42 }
  0x57   :  { %188 = vmatpush2.msra.mxu0 %v138_v43 }
  0x58   :  { %189 = vmatprep.subr.mxu0 %v137_v44 }
  0x59   :  { %190 = vmatpush2.msra.mxu0 %v136_v45 }
  0x5a   :  { %191 = vmatprep.subr.mxu0 %v135_v46 }
  0x5b   :  { %192 = vmatpush2.msra.mxu0 %v134_v47 }
  0x5c   :  { %193 = vmatprep.subr.mxu0 %v133_v48 }
  0x5d   :  { %194 = vmatpush2.msra.mxu0 %v132_v49 }
  0x5e   :  { %195 = vmatprep.subr.mxu0 %v131_v50 }
  0x5f   :  { %196 = vmatpush2.msra.mxu0 %v130_v51 }
  0x60   :  { %197 = vmatprep.subr.mxu0 %v129_v52 }
  0x61   :  { %198 = vmatpush2.msra.mxu0 %v128_v53 }
  0x62   :  { %199 = vmatprep.subr.mxu0 %v127_v54 }
  0x63   :  { %200 = vmatpush2.msra.mxu0 %v126_v55 }
  0x64   :  { %201 = vmatprep.subr.mxu0 %v125_v56 }
  0x65   :  { %202 = vmatpush2.msra.mxu0 %v124_v57 }
  0x66   :  { %203 = vmatprep.subr.mxu0 %v123_v58 }
  0x67   :  { %204 = vmatpush2.msra.mxu0 %v122_v59 }
  0x68   :  { %205 = vmatprep.subr.mxu0 %v121_v60 }
  0x69   :  { %206 = vmatpush2.msra.mxu0 %v120_v61 }
  0x6a   :  { %207 = vmatprep.subr.mxu0 %v119_v62 }
  0x6b   :  { %208 = vmatpush2.msra.mxu0 %v118_v63 }
  0x6c   :  { %209 = vmatprep.subr.mxu0 %v117_v0 }
  0x6d   :  { %210 = vmatpush2.msra.mxu0 %v116_v1 }
  0x6e   :  { %211 = vmatprep.subr.mxu0 %v115_v2 }
  0x6f   :  { %212 = vmatpush2.msra.mxu0 %v114_v3 }
  0x70   :  { %213 = vmatprep.subr.mxu0 %v113_v4 }
  0x71   :  { %214 = vmatpush2.msra.mxu0 %v112_v5 }
  0x72   :  { %215 = vmatprep.subr.mxu0 %v111_v6 }
  0x73   :  { %216 = vmatpush2.msra.mxu0 %v110_v7 }
  0x74   :  { %218 = vmatmul.mubr.f32.vlgmr.msra.gmra.mxu0 %v515_v32 }
 0x100   :  { %v294_v8 = vpop.f32.mrf.mxu1 }
 0x102   :  { %v296_v11 = vpop.f32.mrf.mxu1 }
 0x134   :  { %v219_v9 = vpop.f32.mrf.mxu0 }
 0x135   :  { %v295_v10 = vadd.f32 %v294_v8, %v219_v9 }
 0x136   :  { %v221_v12 = vpop.f32.mrf.mxu0 }
 0x137   :  { %v297_v13 = vadd.f32 %v296_v11, %v221_v12  ;;  %v299_v14 = vmul.f32 %v295_v10, %v295_v10 }
 0x139   :  { %v300_v15 = vmul.f32 %v297_v13, %v297_v13 }
 0x13b   :  { %v301_v16 = vadd.f32 %v300_v15, %v299_v14 }
 0x13d   :  { %353 = vrsqrt.f32 %v301_v16  ;;  %vm304_vm1 = vcmp.eq.f32.partialorder %v301_v16, inf  ;;  %v307_v19 = vand.u32 2147483648, %v301_v16  ;;  %vm306_vm2 = vcmp.eq.f32.partialorder %v301_v16, 0.0 }
 0x14a   :  { %v354_v17 = vpop.eup %353 }
 0x14b   :  { %v303_v18 = vmul.f32 %v354_v17, %v301_v16 }
 0x14d   :  { %v305_v20 = vsel %vm304_vm1, %v301_v16, %v303_v18 }
 0x14e   :  { %v308_v21 = vsel %vm306_vm2, %v307_v19, %v305_v20 }
 0x14f   :  { %v318_v22 = vadd.f32 1e-06, %v308_v21  ;;  %v316_v24 = vadd.f32 %v344_v23, %v308_v21 }
 0x151   :  { %355 = vrcp.f32 %v318_v22  ;;  %v317_v25 = vmax.f32 %v316_v24, 0.0 }
 0x15e   :  { %v356_v26 = vpop.eup %355 }
 0x15f   :  { %v320_v27 = vmul.f32 %v356_v26, %v317_v25 }
 0x161   :  { %v323_v28 = vmul.f32 %v320_v27, %v297_v13  ;;  %v321_v29 = vmul.f32 %v320_v27, %v295_v10 }
 0x163   :  { %324 = vst [vmem:[#allocation10 + $0x2] sm:$0x3] %v323_v28  ;;  %322 = vst [vmem:[#allocation10] sm:$0x3] %v321_v29 }
 0x164   :  { %448 = shalt.err (!%p445_p10)
}
 0x165   :  { %334 = dma.vmem_to_hbm [thread:$0]  %s332_s14, 64, %s531_s5, [#allocation4]  }
 0x166   :  { %463 = dma.done.wait [#allocation4], 64  }
 0x167   :  { %464 = vsyncadd [#allocation4], 4294967232 }
 0x168   :  { %338 = vsyncpa [#allocation3], 1 }
 0x169   :  { %339 = vsyncpa [#allocation6], 1 }
 0x16a   :  { %340 = vsyncpa [#allocation9], 1 }
 0x16b   :  { %341 = vsyncpa [#allocation4], 1 }

</bundles_post_ra>
